<compile_context>
chip_gen: v6e
topology: v6e:2x2x1
jax: 0.10.0
libtpu: 0.0.40
codegen_flags: <defaults>
</compile_context>

<pallas_src>
import functools

import jax
import jax.numpy as jnp
from jax.experimental import pallas as pl
from jax.experimental.pallas import tpu as pltpu

_LANES = 128
_TILE_ROWS = 1024   # (1024, 128) f32 tile = 512 KiB per input per buffer
_NUM_CORES = 2      # v7x has 2 TensorCores; harmless (sequential) on v5e/v6e


def _huber_sum_kernel(o_ref, t_ref, out_ref, acc_ref, *, delta, valid_rows,
                      tile_rows, blocks_per_core, need_mask):
    c = pl.program_id(0)              # core / parallel axis
    i = pl.program_id(1)              # reduction axis (row-blocks)

    # Zero the resident VMEM accumulator at the start of each core's sweep.
    @pl.when(i == 0)
    def _():
        acc_ref[...] = jnp.zeros_like(acc_ref)

    o = o_ref[...].astype(jnp.float32)
    t = t_ref[...].astype(jnp.float32)

    abs_error = jnp.abs(o - t)
    d = jnp.float32(delta)
    quadratic = jnp.minimum(abs_error, d)     # min(|e|, delta)
    linear = abs_error - quadratic
    loss = 0.5 * quadratic * quadratic + d * linear

    if need_mask:
        # Mask rows past the logical end of the array (partial edge block and
        # clamped duplicate blocks handed to the second core).
        row_start = (c * blocks_per_core + i) * tile_rows
        row_ids = row_start + jax.lax.broadcasted_iota(
            jnp.int32, (tile_rows, _LANES), 0)
        loss = jnp.where(row_ids < valid_rows, loss, 0.0)

    # Pure-VPU accumulate; no cross-lane work in the steady-state loop.
    acc_ref[...] += loss

    # One cross-sublane reduce per core, at the very last step.
    @pl.when(i == pl.num_programs(1) - 1)
    def _():
        out_ref[0] = jnp.sum(acc_ref[...], axis=0, keepdims=True)


def huber_loss(output, target, delta):
    """Huber loss (mean-reduced), matching the PyTorch HuberLoss module."""
    assert output.shape == target.shape
    n_elems = output.size

    # Flatten in native dtype (no wrapper-side f32 cast -> no extra HBM bytes).
    flat_o = jnp.ravel(output)
    flat_t = jnp.ravel(target)

    # Only pad the ragged (<128-element) remainder up to a lane boundary.
    # Rare for DL tensors; zero padding contributes exactly 0 to the loss.
    pad = (-n_elems) % _LANES
    if pad:
        flat_o = jnp.pad(flat_o, (0, pad))
        flat_t = jnp.pad(flat_t, (0, pad))
    rows = (n_elems + pad) // _LANES

    o2d = flat_o.reshape(rows, _LANES)
    t2d = flat_t.reshape(rows, _LANES)

    # Tile sizing: full-size tile, clamped for tiny inputs (block == full dim
    # is always a legal TPU block shape).
    tile_rows = min(_TILE_ROWS, rows)
    nb = pl.cdiv(rows, tile_rows)             # total row-blocks
    nb_half = pl.cdiv(nb, _NUM_CORES)         # row-blocks per core
    # Masking needed only if the tiling is ragged or the core split over-covers.
    need_mask = (nb * tile_rows != rows) or (_NUM_CORES * nb_half != nb)

    def in_map(c, i):
        # Clamp so no block starts past the array end (clamped duplicates are
        # fully masked out in-kernel, so they contribute nothing).
        return (jnp.minimum(c * nb_half + i, nb - 1), 0)

    kernel = functools.partial(
        _huber_sum_kernel,
        delta=float(delta),
        valid_rows=rows,
        tile_rows=tile_rows,
        blocks_per_core=nb_half,
        need_mask=need_mask,
    )

    bytes_accessed = (n_elems * output.dtype.itemsize
                      + n_elems * target.dtype.itemsize
                      + _NUM_CORES * _LANES * 4)

    partials = pl.pallas_call(
        kernel,
        out_shape=jax.ShapeDtypeStruct((_NUM_CORES, 1, _LANES), jnp.float32),
        grid_spec=pltpu.PrefetchScalarGridSpec(
            num_scalar_prefetch=0,
            grid=(_NUM_CORES, nb_half),
            in_specs=[
                pl.BlockSpec((tile_rows, _LANES), in_map),
                pl.BlockSpec((tile_rows, _LANES), in_map),
            ],
            out_specs=pl.BlockSpec((1, 1, _LANES), lambda c, i: (c, 0, 0)),
            scratch_shapes=[pltpu.VMEM((tile_rows, _LANES), jnp.float32)],
        ),
        compiler_params=pltpu.CompilerParams(
            dimension_semantics=("parallel", "arbitrary"),
        ),
        cost_estimate=pl.CostEstimate(
            flops=8 * n_elems,
            transcendentals=0,
            bytes_accessed=bytes_accessed,
        ),
    )(o2d, t2d)

    # Final tiny cross-lane/core reduce + mean over the ORIGINAL element count.
    return jnp.sum(partials) / jnp.float32(n_elems)


def huber_loss_ref(output, target, delta):
    abs_error = jnp.abs(output - target)
    d = jnp.full_like(output, delta)
    quadratic = jnp.minimum(abs_error, d)
    linear = abs_error - quadratic
    loss = 0.5 * quadratic**2 + d * linear
    return jnp.mean(loss)


if __name__ == "__main__":
    key = jax.random.PRNGKey(0)
    k1, k2 = jax.random.split(key)

    # NCHW inputs, small shapes.
    x = jax.random.normal(k1, (2, 4, 16, 16), dtype=jnp.float32)
    y = jax.random.normal(k2, (2, 4, 16, 16), dtype=jnp.float32)
    delta = 0.5  # module __init__ hyperparameter, chosen deterministically

    out = jax.block_until_ready(huber_loss(x, y, delta))
    ref = jax.block_until_ready(huber_loss_ref(x, y, delta))
    assert jnp.allclose(out, ref, rtol=1e-5, atol=1e-6), (out, ref)

    # Extra check: ragged size (numel % 128 != 0) + bf16 inputs.
    k3, k4 = jax.random.split(k1)
    xb = jax.random.normal(k3, (3, 5, 7, 11), dtype=jnp.float32).astype(jnp.bfloat16)
    yb = jax.random.normal(k4, (3, 5, 7, 11), dtype=jnp.float32).astype(jnp.bfloat16)
    out2 = jax.block_until_ready(huber_loss(xb, yb, delta))
    ref2 = jax.block_until_ready(
        huber_loss_ref(xb.astype(jnp.float32), yb.astype(jnp.float32), delta))
    assert jnp.allclose(out2, ref2, rtol=1e-2, atol=1e-3), (out2, ref2)

    print("KERNEL_OK")
</pallas_src>

<mosaic_0001>
module attributes {stable_mosaic.version = 11 : i64} {
  func.func @_huber_sum_kernel(%arg0: i32, %arg1: i32, %arg2: memref<16x128xf32, #tpu.memory_space<vmem>>, %arg3: memref<16x128xf32, #tpu.memory_space<vmem>>, %arg4: memref<1x1x128xf32, #tpu.memory_space<vmem>>, %arg5: memref<16x128xf32, #tpu.memory_space<vmem>>) attributes {dimension_semantics = [#tpu.dimension_semantics<parallel>, #tpu.dimension_semantics<arbitrary>], iteration_bounds = array<i64: 2, 1>, scalar_prefetch = 0 : i64, scratch_operands = 1 : i64, tpu.core_type = #tpu.core_type<tc>, window_params = [{transform_indices = @transform_0, window_bounds = array<i64: 16, 128>}, {transform_indices = @transform_1, window_bounds = array<i64: 16, 128>}, {transform_indices = @transform_2, window_bounds = array<i64: 1, 1, 128>}]} {
    %c0_i32 = arith.constant 0 : i32
    %0 = arith.cmpi eq, %arg1, %c0_i32 : i32
    %1 = arith.extui %0 : i1 to i32
    %c0_i32_0 = arith.constant 0 : i32
    %2 = arith.cmpi ne, %1, %c0_i32_0 : i32
    scf.if %2 {
      %cst_14 = arith.constant 0.000000e+00 : f32
      %32 = vector.broadcast %cst_14 : f32 to vector<16x128xf32>
      %c0_15 = arith.constant 0 : index
      %c0_16 = arith.constant 0 : index
      %33 = vector.load %arg5[%c0_15, %c0_16] : memref<16x128xf32, #tpu.memory_space<vmem>>, vector<16x128xf32>
      tpu.vector_store %arg5[%c0_15, %c0_16], %32 {strides = array<i32>} : memref<16x128xf32, #tpu.memory_space<vmem>>, vector<16x128xf32>,
    } else {
    }
    %c0 = arith.constant 0 : index
    %c0_1 = arith.constant 0 : index
    %3 = vector.load %arg2[%c0, %c0_1] : memref<16x128xf32, #tpu.memory_space<vmem>>, vector<16x128xf32>
    %c0_2 = arith.constant 0 : index
    %c0_3 = arith.constant 0 : index
    %4 = vector.load %arg3[%c0_2, %c0_3] : memref<16x128xf32, #tpu.memory_space<vmem>>, vector<16x128xf32>
    %5 = arith.subf %3, %4 : vector<16x128xf32>
    %6 = math.absf %5 : vector<16x128xf32>
    %cst = arith.constant 5.000000e-01 : f32
    %7 = vector.broadcast %cst : f32 to vector<16x128xf32>
    %8 = arith.minimumf %6, %7 : vector<16x128xf32>
    %9 = arith.subf %6, %8 : vector<16x128xf32>
    %cst_4 = arith.constant 5.000000e-01 : f32
    %10 = vector.broadcast %cst_4 : f32 to vector<16x128xf32>
    %11 = arith.mulf %10, %8 : vector<16x128xf32>
    %12 = arith.mulf %11, %8 : vector<16x128xf32>
    %cst_5 = arith.constant 5.000000e-01 : f32
    %13 = vector.broadcast %cst_5 : f32 to vector<16x128xf32>
    %14 = arith.mulf %13, %9 : vector<16x128xf32>
    %15 = arith.addf %12, %14 : vector<16x128xf32>
    %c1_i32 = arith.constant 1 : i32
    %16 = arith.muli %arg0, %c1_i32 : i32
    %17 = arith.addi %16, %arg1 : i32
    %c16_i32 = arith.constant 16 : i32
    %18 = arith.muli %17, %c16_i32 : i32
    %19 = tpu.iota {dimensions = array<i32: 0>} : vector<16x128xi32>
    %20 = vector.broadcast %18 : i32 to vector<16x128xi32>
    %21 = arith.addi %20, %19 : vector<16x128xi32>
    %c16_i32_6 = arith.constant 16 : i32
    %22 = vector.broadcast %c16_i32_6 : i32 to vector<16x128xi32>
    %23 = arith.cmpi slt, %21, %22 : vector<16x128xi32>
    %cst_7 = arith.constant 0.000000e+00 : f32
    %24 = vector.broadcast %cst_7 : f32 to vector<16x128xf32>
    %25 = arith.select %23, %15, %24 : vector<16x128xi1>, vector<16x128xf32>
    %c0_8 = arith.constant 0 : index
    %c0_9 = arith.constant 0 : index
    %26 = vector.load %arg5[%c0_8, %c0_9] : memref<16x128xf32, #tpu.memory_space<vmem>>, vector<16x128xf32>
    %27 = arith.addf %26, %25 : vector<16x128xf32>
    %c0_10 = arith.constant 0 : index
    %c0_11 = arith.constant 0 : index
    %28 = vector.load %arg5[%c0_10, %c0_11] : memref<16x128xf32, #tpu.memory_space<vmem>>, vector<16x128xf32>
    tpu.vector_store %arg5[%c0_10, %c0_11], %27 {strides = array<i32>} : memref<16x128xf32, #tpu.memory_space<vmem>>, vector<16x128xf32>,
    %c0_i32_12 = arith.constant 0 : i32
    %29 = arith.cmpi eq, %arg1, %c0_i32_12 : i32
    %30 = arith.extui %29 : i1 to i32
    %c0_i32_13 = arith.constant 0 : i32
    %31 = arith.cmpi ne, %30, %c0_i32_13 : i32
    scf.if %31 {
      %c0_14 = arith.constant 0 : index
      %c0_15 = arith.constant 0 : index
      %32 = vector.load %arg5[%c0_14, %c0_15] : memref<16x128xf32, #tpu.memory_space<vmem>>, vector<16x128xf32>
      %cst_16 = arith.constant dense<0.000000e+00> : vector<128xf32>
      %33 = vector.multi_reduction <add>, %32, %cst_16 [0] : vector<16x128xf32> to vector<128xf32>
      %34 = vector.shape_cast %33 : vector<128xf32> to vector<1x128xf32>
      %c0_17 = arith.constant 0 : index
      %c0_18 = arith.constant 0 : index
      %c0_19 = arith.constant 0 : index
      %35 = vector.load %arg4[%c0_17, %c0_18, %c0_19] : memref<1x1x128xf32, #tpu.memory_space<vmem>>, vector<1x1x128xf32>
      %36 = vector.shape_cast %35 : vector<1x1x128xf32> to vector<1x128xf32>
      %37 = vector.shape_cast %34 : vector<1x128xf32> to vector<1x1x128xf32>
      tpu.vector_store %arg4[%c0_17, %c0_18, %c0_19], %37 {strides = array<i32>} : memref<1x1x128xf32, #tpu.memory_space<vmem>>, vector<1x1x128xf32>,
    } else {
    }
    return
  }
  func.func @transform_0(%arg0: i32, %arg1: i32) -> (i32, i32) {
    %c1_i32 = arith.constant 1 : i32
    %0 = arith.muli %arg0, %c1_i32 : i32
    %1 = arith.addi %0, %arg1 : i32
    %c0_i32 = arith.constant 0 : i32
    %2 = arith.minsi %1, %c0_i32 : i32
    %c0_i32_0 = arith.constant 0 : i32
    %c0_i32_1 = arith.constant 0 : i32
    return %2, %c0_i32_0 : i32, i32
  }
  func.func @transform_1(%arg0: i32, %arg1: i32) -> (i32, i32) {
    %c1_i32 = arith.constant 1 : i32
    %0 = arith.muli %arg0, %c1_i32 : i32
    %1 = arith.addi %0, %arg1 : i32
    %c0_i32 = arith.constant 0 : i32
    %2 = arith.minsi %1, %c0_i32 : i32
    %c0_i32_0 = arith.constant 0 : i32
    %c0_i32_1 = arith.constant 0 : i32
    return %2, %c0_i32_0 : i32, i32
  }
  func.func @transform_2(%arg0: i32, %arg1: i32) -> (i32, i32, i32) {
    %c0_i32 = arith.constant 0 : i32
    %c0_i32_0 = arith.constant 0 : i32
    %c0_i32_1 = arith.constant 0 : i32
    return %arg0, %c0_i32, %c0_i32_0 : i32, i32, i32
  }
}

</mosaic_0001>

<bundles_post_ra>
// kernel: tpu_custom_call.1
= control target key start
LH: loop header
LB: loop body
LE: loop exit
PB: predicated region body
PF: predicated region fallthrough
CT: control target
= control target key end

     0   :  { %7 = vsyncpa [#allocation4], 0  ;;  %s883_s0 = inlined_call_operand.hbm [shape: f32[16,128], index: 0, kind: input, shape index: {}]   ;;  %s884_s1 = inlined_call_operand.hbm [shape: f32[16,128], index: 1, kind: input, shape index: {}]   ;;  %s885_s2 = inlined_call_operand.hbm [shape: f32[2,1,128], index: 2, kind: output, shape index: {}]  }
   0x1   :  { %9 = vsyncpa [#allocation4 + $0x1], 0 }
   0x2   :  { %10 = vsyncpa [#allocation7], 0 }
   0x3   :  { %12 = vsyncpa [#allocation7 + $0x1], 0 }
   0x4   :  { %13 = vsyncpa [#allocation5], 0 }
   0x5   :  { %15 = vsyncpa [#allocation5 + $0x1], 0  ;;  %s701_s9 = smov 0   ;;  %s703_s10 = smov 0  }
   0x6   :  { %s705_s11 = smov 0   ;;  %s707_s12 = smov 0  }
   0x7   :  { %s709_s13 = smov 0   ;;  %s711_s14 = smov 0  }
   0x8   :  { %s713_s15 = smov 0   ;;  %s715_s16 = smov 0  }
   0x9 LB: > { %s406_s17 = sadd.s32 4294967295, %s679_s16   ;;  %s407_s18 = sadd.s32 4294967294, %s679_s16   ;;  %s679_s16 = sphi %s715_s16, %s21_s16   ;;  %s675_s15 = sphi %s713_s15, %s904_s15   ;;  %s671_s14 = sphi %s711_s14, %s903_s14   ;;  %s667_s13 = sphi %s709_s13, %s873_s13   ;;  %s663_s12 = sphi %s707_s12, %s902_s12   ;;  %s659_s11 = sphi %s705_s11, %s901_s11   ;;  %s655_s10 = sphi %s703_s10, %s900_s10   ;;  %s651_s9 = sphi %s701_s9, %s899_s9  }
   0xa   : > { %s33_s19 = sadd.s32 1, %s675_s15  ;;  %p648_p1 = scmp.ne.s32.totalorder %s667_s13, 0 }
   0xb   : > { %p35_p0 = scmp.ge.s32.totalorder %s33_s19, 2  ;;  %p54_p2 = scmp.eq.s32.totalorder %s679_s16, 0 }
   0xc   : > { %p59_p3 = scmp.ne.s32.totalorder %s667_s13, %s663_s12  ;;  %p60_p5 = scmp.eq.s32.totalorder %s406_s17, 0 }
   0xd   : > { %s906_s19 = smov (%p35_p0, %s33_s19), 0  ;;  %p747_p4 = por %p648_p1, %p54_p2 }
   0xe   : > { %p751_p6 = por %p60_p5, %p59_p3  ;;  %s101_s22 = ssub.s32 %s675_s15, %s906_s19 }
   0xf   : > { %p102_p7 = scmp.eq.s32.totalorder %s101_s22, 0  ;;  %s104_s23 = sadd.s32 1, %s659_s11 }
  0x10   : > { %s889_s21 = scalar_select %p751_p6, 1, 0 }
  0x11   : > { %s759_s24 = scalar_select %p102_p7, %s659_s11, %s104_s23  }
  0x12   : > { %p114_p8 = scmp.ne.s32.totalorder %s659_s11, %s655_s10  ;;  %p115_p9 = scmp.eq.s32.totalorder %s406_s17, 1 }
  0x13   : > { %p120_p10 = scmp.ne.s32.totalorder %s655_s10, %s651_s9  ;;  %p121_p11 = scmp.eq.s32.totalorder %s407_s18, 1 }
  0x14   : > { %p765_p12 = por %p115_p9, %p114_p8  ;;  %p442_p1 = scmp.lt.s32.totalorder %s679_s16, 2 }
  0x15   : > { %p770_p0 = por %p121_p11, %p120_p10  ;;  %s681_s27 = smov [#allocation3]  }
  0x16   : > { %s890_s25 = scalar_select %p765_p12, 1, 0 }
  0x17   : > { %s891_s26 = scalar_select %p770_p0, 1, 0 }
  0x18   : > { %s155_s28 = sshll.u32 %s681_s27, 4  ;;  %p777_p2 = pnand %p442_p1, %p747_p4  ;;  %s156_s28 = int_to_ptr.vmem [resolvable:$true] %s155_s28 }
  0x19   : > { %s518_s4 = scalar_lea.hbm %s883_s0, 256 }
  0x1a   : > { %p519_p3 = scmp.ne.s32.totalorder %s883_s0, %s518_s4  ;;  %p520_p5 = pneg %p777_p2 }
  0x1b   : > { %p525_p8 = scmp.lt.s32.totalorder %s518_s4, %s518_s4 }
  0x1c   : > { %p521_p7 = pnand %p520_p5, %p519_p3 }
  0x1e   : > { %p522_p4 = pneg %p521_p7 }
  0x20   : > { %p527_p9 = pnand %p525_p8, %p522_p4 }
  0x22   : > { %530 = shalt.err (!%p527_p9)
}
  0x23   : > { %s531_s7 = scalar_lea.vmem %s156_s28, 256  ;;  %s538_s8 = scalar_lea.vmem %s156_s28, 512 }
  0x24   : > { %p532_p10 = scmp.ne.s32.totalorder %s156_s28, %s531_s7  ;;  %p539_p13 = scmp.lt.s32.totalorder %s156_s28, %s156_s28 }
  0x25   : > { %p540_p0 = scmp.lt.s32.totalorder %s538_s8, %s531_s7 }
  0x26   : > { %p534_p11 = pnand %p532_p10, %p520_p5 }
  0x27   : > { %p541_p12 = por %p540_p0, %p539_p13 }
  0x28   : > { %p535_p1 = pneg %p534_p11 }
  0x2a   : > { %p542_p6 = pnand %p541_p12, %p535_p1 }
  0x2c   : > { %545 = shalt.err (!%p542_p6)
}
  0x2d   : > { %s682_s12 = smov 128   ;;  %s683_s17 = smov 8  }
  0x2e   : > { %434 = dma.hbm_to_vmem [thread:$0]  (!%p777_p2), %s883_s0, 256, %s156_s28, [#allocation4], %s682_s12, %s682_s12, %s683_s17  }
  0x2f   : > { %p416_p3 = scmp.ge.s32.totalorder %s679_s16, 1  ;;  %p187_p7 = scmp.lt.s32.totalorder %s679_s16, 3 }
  0x30   : > { %s684_s23 = smov [#allocation6]   ;;  %s546_s4 = scalar_lea.hbm %s884_s1, 256 }
  0x31   : > { %p802_p4 = pnand %p416_p3, %p187_p7  ;;  %s179_s27 = sshll.u32 %s684_s23, 4  ;;  %s180_s27 = int_to_ptr.vmem [resolvable:$true] %s179_s27 }
  0x32   : > { %p547_p6 = scmp.ne.s32.totalorder %s884_s1, %s546_s4  ;;  %p553_p0 = scmp.lt.s32.totalorder %s546_s4, %s546_s4 }
  0x33   : > { %s893_s22 = scalar_select %p802_p4, 1, 0 }
  0x34   : > { %p549_p12 = pnand %p547_p6, %p520_p5 }
  0x36   : > { %p550_p13 = pneg %p549_p12 }
  0x38   : > { %p555_p8 = pnand %p553_p0, %p550_p13 }
  0x3a   : > { %558 = shalt.err (!%p555_p8)
}
  0x3b   : > { %s559_s28 = scalar_lea.vmem %s180_s27, 256  ;;  %s566_s7 = scalar_lea.vmem %s180_s27, 512 }
  0x3c   : > { %p560_p9 = scmp.ne.s32.totalorder %s180_s27, %s559_s28  ;;  %p567_p1 = scmp.lt.s32.totalorder %s180_s27, %s180_s27 }
  0x3d   : > { %p568_p3 = scmp.lt.s32.totalorder %s566_s7, %s559_s28 }
  0x3e   : > { %p562_p10 = pnand %p560_p9, %p520_p5 }
  0x3f   : > { %p569_p7 = por %p568_p3, %p567_p1 }
  0x40   : > { %p563_p11 = pneg %p562_p10 }
  0x42   : > { %p570_p4 = pnand %p569_p7, %p563_p11 }
  0x44   : > { %573 = shalt.err (!%p570_p4)
}
  0x45   : > { %437 = dma.hbm_to_vmem [thread:$0]  (!%p777_p2), %s884_s1, 256, %s180_s27, [#allocation7], %s682_s12, %s682_s12, %s683_s17  }
  0x46   : > { %p894_p6 = scmp.ne.s32.totalorder %s893_s22, 0 }
  0x47   : > { %s193_s20 = sand.u32 (!%p894_p6), 1, %s667_s13   ;;  %p895_p5 = scmp.ne.s32.totalorder (!%p894_p6), %s889_s21, 0 }
  0x48   : > { %191 = sbr.rel (%p894_p6) target bundleno = 122 (0x7a), region = 28  ;;  %s417_s23 = sshll.u32 (!%p894_p6), %s193_s20, 4 }
  0x49   : > { %s194_s30 = scalar_lea.sflag (!%p894_p6), [#allocation4], %s193_s20  ;;  %s197_s3 = scalar_lea.vmem (!%p894_p6), [#allocation3], %s417_s23 }
  0x4d   : > { %637 = dma.done.wait (%p895_p5), %s194_s30, 256  }
  0x4e   : > { %639 = vsyncadd (%p895_p5), %s194_s30, 4294967040  ;;  %s203_s29 = scalar_lea.sflag [#allocation7], %s193_s20  ;;  %s206_s4 = scalar_lea.vmem [#allocation6], %s417_s23 }
  0x4f   : > { %641 = dma.done.wait (%p895_p5), %s203_s29, 256  }
  0x50   : > { %643 = vsyncadd (%p895_p5), %s203_s29, 4294967040  ;;  %v267_v0 = vlaneseq  ;;  %v245_v2 = vld [vmem:[%s197_s3] sm:$0xff]  ;;  %v246_v3 = vld [vmem:[%s197_s3 + $0x8] sm:$0xff]  ;;  %s419_s12 = sshll.u32 %s671_s14, 4  ;;  %s229_s21 = sand.u32 1, %s655_s10  }
  0x51   : > { %v247_v4 = vld [vmem:[%s206_s4] sm:$0xff]  ;;  %v248_v5 = vld [vmem:[%s206_s4 + $0x8] sm:$0xff]  ;;  %v270_v10 = vstv %s419_s12  ;;  %s230_s17 = scalar_lea.vmem [#allocation8], %s229_s21  ;;  %s307_s6 = scalar_lea.hbm %s885_s2, %s419_s12 }
  0x52   : > { %v268_v1 = vshrl.u32 %v267_v0, 7  ;;  %v249_v6 = vsub.f32 %v245_v2, %v247_v4  ;;  %v250_v7 = vsub.f32 %v246_v3, %v248_v5  ;;  %s309_s22 = sshll.u32 %s230_s17, 4  ;;  %s297_s28 = scalar_lea.sflag [#allocation5], %s229_s21  ;;  %s310_s22 = int_to_ptr.vmem [resolvable:$true] %s309_s22 }
  0x53   : > { %s574_s7 = scalar_lea.vmem %s310_s22, 16  ;;  %p896_p4 = scmp.ne.s32.totalorder %s890_s25, 0 }
  0x54   : > { %v251_v8 = vand.u32 2147483647, %v249_v6  ;;  %v269_v9 = vadd.s32 8, %v268_v1  ;;  %v252_v11 = vand.u32 2147483647, %v250_v7  ;;  %v271_v14 = vadd.s32 %v270_v10, %v268_v1  ;;  %p575_p2 = scmp.ne.s32.totalorder %s310_s22, %s574_s7  ;;  %s685_s8 = smov [#allocation8]  }
  0x55   : > { %s578_s18 = sshll.u32 %s685_s8, 4  ;;  %s579_s18 = int_to_ptr.vmem [resolvable:$false] %s578_s18 }
  0x56   : > { %v253_v12 = vmin.f32 %v251_v8, 0.5  ;;  %v254_v13 = vmin.f32 %v252_v11, 0.5  ;;  %v272_v17 = vadd.s32 %v270_v10, %v269_v9  ;;  %vm273_vm0 = vcmp.lt.s32.totalorder %v271_v14, 16  ;;  %p576_p12 = pnand %p575_p2, %p896_p4  ;;  %s580_s20 = scalar_lea.vmem %s579_s18, 32 }
  0x57   : > { %p581_p0 = scmp.lt.s32.totalorder %s310_s22, %s579_s18  ;;  %p582_p8 = scmp.lt.s32.totalorder %s580_s20, %s574_s7 }
  0x58   : > { %v255_v15 = vsub.f32 %v251_v8, %v253_v12  ;;  %v257_v16 = vmul.f32 0.5, %v253_v12  ;;  %v256_v18 = vsub.f32 %v252_v11, %v254_v13  ;;  %v258_v19 = vmul.f32 0.5, %v254_v13  ;;  %p577_p13 = pneg %p576_p12 }
  0x59   : > { %vm274_vm1 = vcmp.lt.s32.totalorder %v272_v17, 16  ;;  %p583_p9 = por %p582_p8, %p581_p0 }
  0x5a   : > { %v259_v20 = vmul.f32 %v257_v16, %v253_v12  ;;  %v261_v21 = vmul.f32 0.5, %v255_v15  ;;  %v260_v22 = vmul.f32 %v258_v19, %v254_v13  ;;  %v262_v23 = vmul.f32 0.5, %v256_v18 }
  0x5b   : > { %p584_p10 = pnand %p583_p9, %p577_p13 }
  0x5c   : > { %v263_v24 = vadd.f32 %v261_v21, %v259_v20  ;;  %v264_v25 = vadd.f32 %v262_v23, %v260_v22 }
  0x5e   : > { %v275_v26 = vsel %vm273_vm0, %v263_v24, 0.0  ;;  %v276_v27 = vsel %vm274_vm1, %v264_v25, 0.0 }
  0x5f   : > { %v288_v28 = vadd.f32 %v276_v27, %v275_v26 }
  0x61   : > { %v289_v29 = vrot.slane %v288_v28, 4 }
  0x63   : > { %v290_v30 = vadd.f32 %v289_v29, %v288_v28 }
  0x65   : > { %v291_v31 = vrot.slane %v290_v30, 2 }
  0x67   : > { %v292_v32 = vadd.f32 %v291_v31, %v290_v30 }
  0x69   : > { %v293_v33 = vrot.slane %v292_v32, 1 }
  0x6b   : > { %v294_v34 = vadd.f32 %v293_v33, %v292_v32 }
  0x6d   : > { %295 = vst [vmem:[%s230_s17] sm:$0x1] %v294_v34 }
  0x6e   : > { %587 = shalt.err (!%p584_p10)
}
  0x6f   : > { %s588_s14 = scalar_lea.hbm %s307_s6, 16  ;;  %s592_s3 = scalar_lea.hbm %s885_s2, 32 }
  0x70   : > { %p589_p11 = scmp.ne.s32.totalorder %s307_s6, %s588_s14  ;;  %p593_p7 = scmp.lt.s32.totalorder %s307_s6, %s885_s2 }
  0x71   : > { %p594_p6 = scmp.lt.s32.totalorder %s592_s3, %s588_s14 }
  0x72   : > { %p590_p1 = pnand %p589_p11, %p896_p4 }
  0x73   : > { %p595_p5 = por %p594_p6, %p593_p7 }
  0x74   : > { %p591_p3 = pneg %p590_p1 }
  0x76   : > { %p596_p2 = pnand %p595_p5, %p591_p3 }
  0x78   : > { %599 = shalt.err (!%p596_p2)
}
  0x79   : > { %429 = dma.vmem_to_hbm [thread:$0]  (%p896_p4), %s310_s22, 16, %s307_s6, %s297_s28  }
  0x7a PF: > { %s321_s12 = sand.u32 1, %s651_s9   ;;  %p897_p12 = scmp.ne.s32.totalorder %s891_s26, 0 }
  0x7b   : > { %p898_p13 = scmp.ge.s32.totalorder %s679_s16, 2  ;;  %s322_s21 = scalar_lea.sflag [#allocation5], %s321_s12 }
  0x7d   : > { %p439_p0 = pnand %p898_p13, %p897_p12 }
  0x7f   : > { %p440_p8 = pneg %p439_p0 }
  0x81   : > { %645 = dma.done.wait (%p440_p8), %s322_s21, 16  }
  0x82   : > { %647 = vsyncadd (%p440_p8), %s322_s21, 4294967280  ;;  %s21_s16 = sadd.s32 1, %s679_s16   ;;  %s899_s9 = smov %s655_s10 }
  0x83   : > { %p18_p9 = scmp.ge.s32.totalorder %s21_s16, 4   ;;  %s900_s10 = smov %s659_s11 }
  0x84   : > { %s901_s11 = smov %s759_s24  ;;  %s902_s12 = smov %s667_s13 }
  0x85   : > { %s873_s13 = smov 0   ;;  %s903_s14 = smov %s675_s15 }
  0x86   : > { %s904_s15 = smov %s906_s19  ;;  %20 = sbr.rel (!%p18_p9) target bundleno = 9 (0x9), region = 94 }
  0x8b   :  { %326 = vsyncpa [#allocation4], 1 }
  0x8c   :  { %328 = vsyncpa [#allocation4 + $0x1], 1 }
  0x8d   :  { %329 = vsyncpa [#allocation7], 1 }
  0x8e   :  { %331 = vsyncpa [#allocation7 + $0x1], 1 }
  0x8f   :  { %332 = vsyncpa [#allocation5], 1 }
  0x90   :  { %334 = vsyncpa [#allocation5 + $0x1], 1 }

</bundles_post_ra>
